<compile_context>
chip_gen: v6e
topology: v6e:2x2x1
jax: 0.10.0
libtpu: 0.0.40
codegen_flags: <defaults>
</compile_context>

<pallas_src>
import functools

import jax
import jax.numpy as jnp
from jax.experimental import pallas as pl
from jax.experimental.pallas import tpu as pltpu


def _mlp_kernel(x_ref, w1_ref, b1_ref, w2_ref, b2_ref, o_ref, *, activation):
    # x_ref:  [in, tb]   (batch on lanes)
    # w1_ref: [hid, in]  (PyTorch Linear layout)
    # b1_ref: [hid, 1]
    # w2_ref: [out, hid]
    # b2_ref: [out, 1]
    # o_ref:  [out, tb]
    input_size = x_ref.shape[0]

    x = x_ref[...].astype(jnp.float32)       # upcast (bf16 DMA path); f32 compute on all gens
    w1 = w1_ref[...]                         # [hid, in] f32
    b1 = b1_ref[...]                         # [hid, 1]  f32

    # ---- fc1 ----
    if input_size <= 8:
        # Tiny contraction dim: VPU outer-product accumulation, fully lane-dense vregs.
        h = b1
        for k in range(input_size):          # statically unrolled (2 vmul + 2 vadd)
            h = h + w1[:, k:k + 1] * x[k:k + 1, :]        # [hid, tb]
    else:
        h = jnp.dot(w1, x, preferred_element_type=jnp.float32) + b1
    h = jnp.maximum(h, 0.0)                  # ReLU

    # ---- fc2 ----  (K = hidden; batch streams through the otherwise-idle MXU)
    out = jnp.dot(w2_ref[...], h, preferred_element_type=jnp.float32)  # [out, tb]
    out = out + b2_ref[...]

    if activation is None:
        pass
    elif activation == "tanh":
        out = jnp.tanh(out)
    elif activation == "leaky_relu":
        out = jnp.where(out >= 0.0, out, 0.01 * out)      # PyTorch default slope 0.01

    # Exact-size, lane-dense store (last dim = tb batch lanes).
    o_ref[...] = out.astype(o_ref.dtype)


def classifier_nn_forward(x, w1, b1, w2, b2, activation=None, *,
                          block_b=4096, compute_dtype=None):
    """ClassifierNN forward.

    x:  [B, input_size]
    w1: [hidden, input_size]  (PyTorch nn.Linear layout), b1: [hidden]
    w2: [output, hidden]      (PyTorch nn.Linear layout), b2: [output]
    Returns [B, output_size].
    """
    if activation not in (None, "tanh", "leaky_relu"):
        raise ValueError(f"unknown activation: {activation}")

    orig_dtype = x.dtype
    B, input_size = x.shape
    hidden = w1.shape[0]
    out_size = w2.shape[0]

    # Batch on the lane axis. (Exact-bytes transpose pass in the wrapper; the kernel
    # itself reads/writes exactly B*in / B*out elements, nothing padded.)
    x_t = x.T                                              # [in, B]
    if compute_dtype is not None:
        # Only the x stream is large enough to matter; weights stay f32 (resident).
        x_t = x_t.astype(compute_dtype)

    w1 = w1.astype(jnp.float32)
    w2 = w2.astype(jnp.float32)
    b1_2d = b1.reshape(hidden, 1).astype(jnp.float32)
    b2_2d = b2.reshape(out_size, 1).astype(jnp.float32)

    # Batch tile: lane axis => multiple of 128 (or the whole batch in a single tile).
    if B <= block_b:
        tb = B
        num_tiles = 1
    else:
        tb = max(128, (block_b // 128) * 128)
        num_tiles = pl.cdiv(B, tb)           # trailing partial block: OOB writes dropped

    kernel = functools.partial(_mlp_kernel, activation=activation)

    out_t = pl.pallas_call(
        kernel,
        out_shape=jax.ShapeDtypeStruct((out_size, B), jnp.float32),
        grid=(num_tiles,),
        in_specs=[
            pl.BlockSpec((input_size, tb), lambda i: (0, i)),   # x.T: tiled over batch lanes
            pl.BlockSpec((hidden, input_size), lambda i: (0, 0)),  # w1: VMEM resident
            pl.BlockSpec((hidden, 1), lambda i: (0, 0)),            # b1: resident
            pl.BlockSpec((out_size, hidden), lambda i: (0, 0)),     # w2: resident
            pl.BlockSpec((out_size, 1), lambda i: (0, 0)),          # b2: resident
        ],
        out_specs=pl.BlockSpec((out_size, tb), lambda i: (0, i)),   # exact-size output
        compiler_params=pltpu.CompilerParams(
            # Independent batch tiles -> shardable across v7x's 2 TensorCores.
            dimension_semantics=("parallel",),
        ),
    )(x_t, w1, b1_2d, w2, b2_2d)

    # Back to the PyTorch [B, out] convention (exact-bytes transpose of a tiny-row array).
    return out_t.T.astype(orig_dtype)


def _init_linear(key, fan_in, fan_out, dtype=jnp.float32):
    """PyTorch-style Linear init: U(-1/sqrt(fan_in), 1/sqrt(fan_in)).

    Weight is returned in the native PyTorch layout [fan_out, fan_in]."""
    kw, kb = jax.random.split(key)
    bound = 1.0 / jnp.sqrt(jnp.asarray(fan_in, dtype))
    w = jax.random.uniform(kw, (fan_out, fan_in), dtype, minval=-bound, maxval=bound)
    b = jax.random.uniform(kb, (fan_out,), dtype, minval=-bound, maxval=bound)
    return w, b


def _ref_forward(x, w1, b1, w2, b2, activation):
    h = jnp.maximum(x @ w1.T + b1, 0.0)
    logits = h @ w2.T + b2
    if activation is None:
        return logits
    if activation == "tanh":
        return jnp.tanh(logits)
    return jnp.where(logits >= 0, logits, 0.01 * logits)


if __name__ == "__main__":
    # Small shapes consistent with the 2D experiment: 2-D inputs, binary classifier.
    batch = 8
    input_size = 2
    hidden_size = 32
    output_size = 2

    key = jax.random.PRNGKey(0)
    kx, k1, k2, kx2 = jax.random.split(key, 4)

    x = jax.random.normal(kx, (batch, input_size), jnp.float32)
    w1, b1 = _init_linear(k1, input_size, hidden_size)     # [hidden, input]
    w2, b2 = _init_linear(k2, hidden_size, output_size)    # [output, hidden]

    # 1) All three activation variants, f32, single tile.
    for act in (None, "tanh", "leaky_relu"):
        out = classifier_nn_forward(x, w1, b1, w2, b2, activation=act)
        jax.block_until_ready(out)
        ref = _ref_forward(x, w1, b1, w2, b2, act)
        assert out.shape == (batch, output_size)
        assert jnp.allclose(out, ref, atol=1e-5, rtol=1e-5), act

    # 2) Larger, non-aligned batch with a small tile -> exercises multi-tile grid,
    #    the trailing partial block (dropped OOB writes), and the parallel grid axis.
    x_big = jax.random.normal(kx2, (1000, input_size), jnp.float32)
    out_big = classifier_nn_forward(x_big, w1, b1, w2, b2, activation="tanh", block_b=256)
    jax.block_until_ready(out_big)
    ref_big = _ref_forward(x_big, w1, b1, w2, b2, "tanh")
    assert jnp.allclose(out_big, ref_big, atol=1e-5, rtol=1e-5)

    # 3) bf16 x-stream (DMA-byte saving); in-kernel compute stays f32 -> tight-ish tol.
    out_bf16 = classifier_nn_forward(x_big, w1, b1, w2, b2, activation=None,
                                     compute_dtype=jnp.bfloat16)
    jax.block_until_ready(out_bf16)
    ref_none = _ref_forward(x_big, w1, b1, w2, b2, None)
    assert jnp.allclose(out_bf16, ref_none, atol=5e-2, rtol=5e-2)

    print("KERNEL_OK")
</pallas_src>

<mosaic_0001>
module attributes {stable_mosaic.version = 11 : i64} {
  func.func @_mlp_kernel(%arg0: i32, %arg1: memref<2x8xf32, #tpu.memory_space<vmem>>, %arg2: memref<32x2xf32, #tpu.memory_space<vmem>>, %arg3: memref<32x1xf32, #tpu.memory_space<vmem>>, %arg4: memref<2x32xf32, #tpu.memory_space<vmem>>, %arg5: memref<2x1xf32, #tpu.memory_space<vmem>>, %arg6: memref<2x8xf32, #tpu.memory_space<vmem>>) attributes {dimension_semantics = [#tpu.dimension_semantics<parallel>], iteration_bounds = array<i64: 1>, scalar_prefetch = 0 : i64, scratch_operands = 0 : i64, tpu.core_type = #tpu.core_type<tc>, window_params = [{transform_indices = @transform_0, window_bounds = array<i64: 2, 8>}, {pipeline_mode = #tpu.pipeline_mode<synchronous>, transform_indices = @transform_1, window_bounds = array<i64: 32, 2>}, {pipeline_mode = #tpu.pipeline_mode<synchronous>, transform_indices = @transform_2, window_bounds = array<i64: 32, 1>}, {pipeline_mode = #tpu.pipeline_mode<synchronous>, transform_indices = @transform_3, window_bounds = array<i64: 2, 32>}, {pipeline_mode = #tpu.pipeline_mode<synchronous>, transform_indices = @transform_4, window_bounds = array<i64: 2, 1>}, {transform_indices = @transform_5, window_bounds = array<i64: 2, 8>}]} {
    %c0 = arith.constant 0 : index
    %c0_0 = arith.constant 0 : index
    %0 = vector.load %arg1[%c0, %c0_0] : memref<2x8xf32, #tpu.memory_space<vmem>>, vector<2x8xf32>
    %c0_1 = arith.constant 0 : index
    %c0_2 = arith.constant 0 : index
    %1 = vector.load %arg2[%c0_1, %c0_2] : memref<32x2xf32, #tpu.memory_space<vmem>>, vector<32x2xf32>
    %c0_3 = arith.constant 0 : index
    %c0_4 = arith.constant 0 : index
    %2 = vector.load %arg3[%c0_3, %c0_4] : memref<32x1xf32, #tpu.memory_space<vmem>>, vector<32x1xf32>
    %3 = vector.extract_strided_slice %1 {offsets = [0, 0], sizes = [32, 1], strides = [1, 1]} : vector<32x2xf32> to vector<32x1xf32>
    %4 = vector.extract_strided_slice %0 {offsets = [0, 0], sizes = [1, 8], strides = [1, 1]} : vector<2x8xf32> to vector<1x8xf32>
    %5 = vector.broadcast %3 : vector<32x1xf32> to vector<32x8xf32>
    %6 = vector.broadcast %4 : vector<1x8xf32> to vector<32x8xf32>
    %7 = arith.mulf %5, %6 : vector<32x8xf32>
    %8 = vector.broadcast %2 : vector<32x1xf32> to vector<32x8xf32>
    %9 = arith.addf %8, %7 : vector<32x8xf32>
    %10 = vector.extract_strided_slice %1 {offsets = [0, 1], sizes = [32, 1], strides = [1, 1]} : vector<32x2xf32> to vector<32x1xf32>
    %11 = vector.extract_strided_slice %0 {offsets = [1, 0], sizes = [1, 8], strides = [1, 1]} : vector<2x8xf32> to vector<1x8xf32>
    %12 = vector.broadcast %10 : vector<32x1xf32> to vector<32x8xf32>
    %13 = vector.broadcast %11 : vector<1x8xf32> to vector<32x8xf32>
    %14 = arith.mulf %12, %13 : vector<32x8xf32>
    %15 = arith.addf %9, %14 : vector<32x8xf32>
    %cst = arith.constant 0.000000e+00 : f32
    %16 = vector.broadcast %cst : f32 to vector<32x8xf32>
    %17 = arith.maximumf %15, %16 : vector<32x8xf32>
    %c0_5 = arith.constant 0 : index
    %c0_6 = arith.constant 0 : index
    %18 = vector.load %arg4[%c0_5, %c0_6] : memref<2x32xf32, #tpu.memory_space<vmem>>, vector<2x32xf32>
    %cst_7 = arith.constant dense<0.000000e+00> : vector<2x8xf32>
    %19 = tpu.matmul %18, %17, %cst_7 {dimension_numbers = #tpu.dot_dimension_numbers<[1], [0], [0], [1], [0, 0, 1, 1], [], []>} : vector<2x32xf32>, vector<32x8xf32>, vector<2x8xf32> -> vector<2x8xf32>
    %c0_8 = arith.constant 0 : index
    %c0_9 = arith.constant 0 : index
    %20 = vector.load %arg5[%c0_8, %c0_9] : memref<2x1xf32, #tpu.memory_space<vmem>>, vector<2x1xf32>
    %21 = vector.broadcast %20 : vector<2x1xf32> to vector<2x8xf32>
    %22 = arith.addf %19, %21 : vector<2x8xf32>
    %c0_10 = arith.constant 0 : index
    %c0_11 = arith.constant 0 : index
    %23 = vector.load %arg6[%c0_10, %c0_11] : memref<2x8xf32, #tpu.memory_space<vmem>>, vector<2x8xf32>
    tpu.vector_store %arg6[%c0_10, %c0_11], %22 {strides = array<i32>} : memref<2x8xf32, #tpu.memory_space<vmem>>, vector<2x8xf32>,
    return
  }
  func.func @transform_0(%arg0: i32) -> (i32, i32) {
    %c0_i32 = arith.constant 0 : i32
    %c0_i32_0 = arith.constant 0 : i32
    return %c0_i32, %arg0 : i32, i32
  }
  func.func @transform_1(%arg0: i32) -> (i32, i32) {
    %c0_i32 = arith.constant 0 : i32
    %c0_i32_0 = arith.constant 0 : i32
    %c0_i32_1 = arith.constant 0 : i32
    return %c0_i32, %c0_i32_0 : i32, i32
  }
  func.func @transform_2(%arg0: i32) -> (i32, i32) {
    %c0_i32 = arith.constant 0 : i32
    %c0_i32_0 = arith.constant 0 : i32
    %c0_i32_1 = arith.constant 0 : i32
    return %c0_i32, %c0_i32_0 : i32, i32
  }
  func.func @transform_3(%arg0: i32) -> (i32, i32) {
    %c0_i32 = arith.constant 0 : i32
    %c0_i32_0 = arith.constant 0 : i32
    %c0_i32_1 = arith.constant 0 : i32
    return %c0_i32, %c0_i32_0 : i32, i32
  }
  func.func @transform_4(%arg0: i32) -> (i32, i32) {
    %c0_i32 = arith.constant 0 : i32
    %c0_i32_0 = arith.constant 0 : i32
    %c0_i32_1 = arith.constant 0 : i32
    return %c0_i32, %c0_i32_0 : i32, i32
  }
  func.func @transform_5(%arg0: i32) -> (i32, i32) {
    %c0_i32 = arith.constant 0 : i32
    %c0_i32_0 = arith.constant 0 : i32
    return %c0_i32, %arg0 : i32, i32
  }
}

</mosaic_0001>

<bundles_post_ra>
// kernel: tpu_custom_call.1
= control target key start
LH: loop header
LB: loop body
LE: loop exit
PB: predicated region body
PF: predicated region fallthrough
CT: control target
= control target key end

     0   :  { %v261_v2 = vmov 0   ;;  %s337_s0 = inlined_call_operand.vmem [shape: f32[2,8], index: 0, kind: input, shape index: {}]   ;;  %s338_s1 = inlined_call_operand.vmem [shape: f32[32,2], index: 1, kind: input, shape index: {}]   ;;  %s339_s2 = inlined_call_operand.vmem [shape: f32[32,1], index: 2, kind: input, shape index: {}]   ;;  %s340_s3 = inlined_call_operand.vmem [shape: f32[2,32], index: 3, kind: input, shape index: {}]   ;;  %s341_s4 = inlined_call_operand.vmem [shape: f32[2,1], index: 4, kind: input, shape index: {}]   ;;  %s342_s5 = inlined_call_operand.hbm [shape: f32[2,8], index: 5, kind: output, shape index: {}]  }
   0x1   :  { %v29_v0 = vld [vmem:[%s339_s2 + $0x18] sm:$0xff]  ;;  %234 = vset.pattern.permute.xlu1 %v261_v2  ;;  %233 = vset.pattern.permute.xlu0 %v261_v2  ;;  %v24_v3 = vld [vmem:[%s338_s1 + $0x10] sm:$0xff] }
   0x2   :  { %v25_v1 = vld [vmem:[%s338_s1 + $0x18] sm:$0xff]  ;;  %75 = vperm.xlu1 %234, %v29_v0  }
   0x3   :  { %47 = vperm.xlu0 %233, %v25_v1  }
   0x4   :  { %10 = vsyncpa [#allocation3], 0  ;;  %v262_v4 = vmov 1   ;;  %v23_v5 = vld [vmem:[%s338_s1 + $0x8] sm:$0xff]  ;;  %v263_v6 = vmov 0.0   ;;  %v28_v7 = vld [vmem:[%s339_s2 + $0x10] sm:$0xff]  ;;  %v50_v12 = vlaneseq }
   0x5   :  { %217 = vmatprep.subr.mxu0 %v263_v6  ;;  %v22_v8 = vld [vmem:[%s338_s1] sm:$0xff]  ;;  %v27_v9 = vld [vmem:[%s339_s2 + $0x8] sm:$0xff]  ;;  %vm264_vm0 = vmmov 0   ;;  %vm121_vm1 = vcmask 261120   ;;  %vm195_vm2 = vcmask 58368  }
   0x6   :  { %235 = vset.pattern.permute.xlu1 %v262_v4  ;;  %v26_v10 = vld [vmem:[%s339_s2] sm:$0xff]  ;;  %225 = vmatprep.mubr.msk.f32.mxu0 %vm264_vm0, %v263_v6  ;;  %v51_v13 = vshrl.u32 %v50_v12, 7 }
   0x7   :  { %42 = vperm.xlu0 %233, %v24_v3   ;;  %95 = vperm.xlu1 %235, %v25_v1   ;;  %v115_v11 = vld [vmem:[%s341_s4] sm:$0x3]  ;;  %s265_s4 = smov [#allocation2]  }
   0x8   :  { %v52_v14 = vsub.s32 0, %v51_v13  ;;  %v21_v15 = vld [vmem:[%s337_s0] sm:$0x3]  ;;  %v100_v17 = vsub.s32 1, %v51_v13  ;;  %s203_s12 = sshll.u32 %s265_s4, 4  ;;  %s204_s12 = int_to_ptr.vmem [resolvable:$true] %s203_s12 }
   0x9   :  { %v114_v51 = vld [vmem:[%s340_s3] sm:$0x3]  ;;  %s239_s13 = scalar_lea.vmem %s204_s12, 32  ;;  %p244_p1 = scmp.lt.s32.totalorder %s204_s12, %s204_s12 }
   0xa   :  { %v53_v16 = vrot.slane %v21_v15, %v52_v14  ;;  %v101_v21 = vrot.slane %v21_v15, %v100_v17  ;;  %p240_p0 = scmp.ne.s32.totalorder %s204_s12, %s239_s13  ;;  %p245_p2 = scmp.lt.s32.totalorder %s239_s13, %s239_s13 }
   0xb   :  { %37 = vperm.xlu0 %233, %v23_v5   ;;  %236 = vset.pattern.permute.xlu1 %v261_v2 }
   0xc   :  { %70 = vperm.xlu1 %236, %v28_v7   ;;  %p246_p3 = por %p245_p2, %p244_p1 }
   0xe   :  { %p247_p4 = pnand %p246_p3, %p240_p0 }
   0xf   :  { %237 = vset.pattern.permute.xlu0 %v262_v4 }
  0x10   :  { %91 = vperm.xlu0 %237, %v24_v3   ;;  %32 = vperm.xlu1 %236, %v22_v8  }
  0x14   :  { %87 = vperm.xlu0 %237, %v23_v5   ;;  %65 = vperm.xlu1 %236, %v27_v9  }
  0x18   :  { %83 = vperm.xlu0 %237, %v22_v8   ;;  %60 = vperm.xlu1 %236, %v26_v10  }
  0x1c   :  { %238 = vset.pattern.permute.xlu0 %v261_v2  ;;  %118 = vperm.xlu1 %236, %v115_v11  }
  0x7d   :  { %v76_v18 = vpop.permute.xlu1 %75 }
  0x7e   :  { %v48_v19 = vpop.permute.xlu0 %47 }
  0x7f   :  { %v57_v20 = vmul.f32 %v53_v16, %v48_v19 }
  0x81   :  { %v81_v24 = vadd.f32 %v76_v18, %v57_v20 }
  0x82   :  { %v43_v22 = vpop.permute.xlu0 %42  ;;  %v96_v23 = vpop.permute.xlu1 %95 }
  0x83   :  { %v105_v25 = vmul.f32 %v101_v21, %v96_v23  ;;  %v56_v30 = vmul.f32 %v53_v16, %v43_v22 }
  0x85   :  { %v109_v27 = vadd.f32 %v105_v25, %v81_v24 }
  0x86   :  { %v38_v26 = vpop.permute.xlu0 %37 }
  0x87   :  { %v71_v28 = vpop.permute.xlu1 %70  ;;  %v113_v29 = vmax.f32 %v109_v27, 0.0  ;;  %v55_v36 = vmul.f32 %v53_v16, %v38_v26 }
  0x88   :  { %v80_v32 = vadd.f32 %v71_v28, %v56_v30 }
  0x89   :  { %218 = vmatpush3.msra.mxu0 %v113_v29 }
  0x8a   :  { %219 = vmatprep.subr.mxu0 %v263_v6 }
  0x8b   :  { %v92_v31 = vpop.permute.xlu0 %91  ;;  %v33_v34 = vpop.permute.xlu1 %32 }
  0x8c   :  { %v104_v33 = vmul.f32 %v101_v21, %v92_v31  ;;  %v54_v42 = vmul.f32 %v53_v16, %v33_v34 }
  0x8e   :  { %v108_v35 = vadd.f32 %v104_v33, %v80_v32 }
  0x8f   :  { %v88_v37 = vpop.permute.xlu0 %87  ;;  %v66_v40 = vpop.permute.xlu1 %65 }
  0x90   :  { %v112_v38 = vmax.f32 %v108_v35, 0.0  ;;  %v103_v39 = vmul.f32 %v101_v21, %v88_v37  ;;  %v79_v41 = vadd.f32 %v66_v40, %v55_v36 }
  0x92   :  { %220 = vmatpush3.msra.mxu0 %v112_v38  ;;  %v107_v43 = vadd.f32 %v103_v39, %v79_v41 }
  0x93   :  { %v84_v44 = vpop.permute.xlu0 %83  ;;  %221 = vmatprep.subr.mxu0 %v263_v6  ;;  %v61_v46 = vpop.permute.xlu1 %60 }
  0x94   :  { %v102_v45 = vmul.f32 %v101_v21, %v84_v44  ;;  %v111_v47 = vmax.f32 %v107_v43, 0.0  ;;  %v78_v48 = vadd.f32 %v61_v46, %v54_v42 }
  0x96   :  { %v106_v49 = vadd.f32 %v102_v45, %v78_v48  ;;  %222 = vmatpush3.msra.mxu0 %v111_v47 }
  0x97   :  { %223 = vmatprep.subr.mxu0 %v263_v6  ;;  %v119_v52 = vpop.permute.xlu1 %118 }
  0x98   :  { %v110_v50 = vmax.f32 %v106_v49, 0.0 }
  0x9a   :  { %224 = vmatpush3.msra.mxu0 %v110_v50 }
  0x9b   :  { %226 = vmatmul.mubr.msk.f32.vlgmr.msra.gmra.mxu0 %vm121_vm1, %v114_v51 }
 0x15b   :  { %v191_v53 = vpop.f32.mrf.mxu0 }
 0x15c   :  { %v192_v54 = vadd.f32 %v191_v53, %v119_v52 }
 0x15d   :  { %v227_v55 = vpop.f32.mrf.mxu0 }
 0x15e   :  { %196 = vst.msk [vmem:[#allocation2] sm:$0x3] %vm195_vm2, %v192_v54 }
 0x15f   :  { %250 = shalt.err (!%p247_p4)
}
 0x160   :  { %206 = dma.vmem_to_hbm [thread:$0]  %s204_s12, 32, %s342_s5, [#allocation3]  }
 0x161   :  { %259 = dma.done.wait [#allocation3], 32  }
 0x162   :  { %260 = vsyncadd [#allocation3], 4294967264 }
 0x163   :  { %210 = vsyncpa [#allocation3], 1 }

</bundles_post_ra>
